<compile_context>
chip_gen: v5e
topology: v5e:2x2
jax: 0.10.0
libtpu: 0.0.40
codegen_flags: <defaults>
</compile_context>

<pallas_src>
import jax
import jax.numpy as jnp
from jax.experimental import pallas as pl
from jax.experimental.pallas import tpu as pltpu

NH = 1        # self.Nh
D = 200       # self.D
SCALE = float(D // NH) ** -0.5
_SQRT_SCALE = SCALE ** 0.5


# --------------------------------------------------------------------------
# Small-L kernel: whole [L, L] softmax per batch block.
# --------------------------------------------------------------------------
def _attn_small_kernel(x_ref, o_ref):
    # x_ref: (tb, 2*D, L) -- merged channels-first input block
    # o_ref: (tb, D, L)
    dt = x_ref.dtype
    # Fold the softmax scale into the (shared) Q/K operand: D*L multiplies
    # instead of an L*L multiply on the f32 logits.
    kq = x_ref[:, :D, :] * jnp.asarray(_SQRT_SCALE, dtype=dt)
    v = x_ref[:, D:, :]

    # logits in [k, q] layout: logits[b, k, q] = sum_d kq[b,d,k] * kq[b,d,q]
    # (Q == K, so this is just the transpose of the usual [q, k] logits.)
    logits = jnp.einsum("bdk,bdq->bkq", kq, kq,
                        preferred_element_type=jnp.float32)

    # Numerically stable softmax along the key axis (axis=-2 in this layout).
    m = jnp.max(logits, axis=1, keepdims=True)
    e = jnp.exp(logits - m)
    denom = jnp.sum(e, axis=1, keepdims=True)
    w = e * pl.reciprocal(denom, approx=True)          # EUP slot

    # out[b, d, q] = sum_k v[b,d,k] * w[b,k,q] -- canonical [m,k]x[k,n] matmul,
    # no transpose of the weight matrix needed.
    out = jnp.einsum("bdk,bkq->bdq", v, w.astype(dt),
                     preferred_element_type=jnp.float32)
    o_ref[...] = out.astype(o_ref.dtype)


# --------------------------------------------------------------------------
# Flash kernel: online softmax over key tiles; O(L) VMEM per query tile.
# --------------------------------------------------------------------------
def _attn_flash_kernel(q_ref, kv_ref, o_ref, m_sc, l_sc, acc_sc):
    # q_ref : (1, D, tq)     -- first-D-channel slice at the query tile
    # kv_ref: (1, 2*D, tk)   -- full-channel slice at the key tile
    # o_ref : (1, D, tq)
    ki = pl.program_id(2)

    @pl.when(ki == 0)
    def _():
        m_sc[...] = jnp.full_like(m_sc, -jnp.inf)
        l_sc[...] = jnp.zeros_like(l_sc)
        acc_sc[...] = jnp.zeros_like(acc_sc)

    dt = q_ref.dtype
    q = q_ref[...] * jnp.asarray(SCALE, dtype=dt)      # scale folded into Q
    k = kv_ref[:, :D, :]
    v = kv_ref[:, D:, :]

    # s in [k, q] layout (contraction on d for both operands).
    s = jnp.einsum("bdk,bdq->bkq", k, q, preferred_element_type=jnp.float32)

    m_prev = m_sc[...]
    m_new = jnp.maximum(m_prev, jnp.max(s, axis=1, keepdims=True))
    alpha = jnp.exp(m_prev - m_new)
    p = jnp.exp(s - m_new)
    l_sc[...] = alpha * l_sc[...] + jnp.sum(p, axis=1, keepdims=True)
    acc_sc[...] = alpha * acc_sc[...] + jnp.einsum(
        "bdk,bkq->bdq", v, p.astype(dt), preferred_element_type=jnp.float32)
    m_sc[...] = m_new

    @pl.when(ki == pl.num_programs(2) - 1)
    def _():
        o_ref[...] = (acc_sc[...] *
                      pl.reciprocal(l_sc[...], approx=True)).astype(o_ref.dtype)


# --------------------------------------------------------------------------
# VMEM budgeting (generation-aware).
# --------------------------------------------------------------------------
def _vmem_budget_and_limit():
    try:
        cap = int(pltpu.get_tpu_info().vmem_capacity_bytes)
    except Exception:
        cap = 64 << 20  # conservative (v7x-sized) fallback
    limit = min(int(cap * 0.70), 80 << 20)   # explicit scoped-VMEM raise, with headroom
    budget = min(int(cap * 0.40), 40 << 20)  # what tiles are planned against
    return budget, limit


def _single_block_per_batch_bytes(L, itemsize):
    # Double-buffered input (2*D*L) and output (D*L) windows, plus the live f32
    # working set: ~3 L*L temps (logits/e/w) + scaled kq copy + f32 out.
    io = (2 * D * L + D * L) * itemsize * 2
    f32_tmp = 3 * L * L * 4 + 2 * D * L * 4
    return io + f32_tmp


def _pick_batch_block(B, L, itemsize, budget):
    per_batch = _single_block_per_batch_bytes(L, itemsize)
    tb = max(1, min(B, budget // max(1, per_batch)))
    # Keep enough grid steps to shard across cores (v7x has 2 TCs) and to hide
    # the pipeline prologue/epilogue.
    if B >= 4:
        tb = min(tb, B // 4)
    elif B >= 2:
        tb = min(tb, B // 2)
    tb = max(1, tb)
    while B % tb:
        tb -= 1
    return tb


# --------------------------------------------------------------------------
# Wrapper.
# --------------------------------------------------------------------------
def self_attention(queries):
    """queries: [B, 2*D, L] (channels-first, like the PyTorch module input).

    Returns: [B, D, L]  (matches `combine_last_two_dim(...).transpose(1, 2)`).
    """
    B, C, L = queries.shape
    assert C == 2 * D, f"expected {2 * D} channels, got {C}"
    itemsize = queries.dtype.itemsize
    budget, vmem_limit = _vmem_budget_and_limit()

    cost = pl.CostEstimate(
        flops=2 * 2 * B * L * L * D,          # two matmuls
        transcendentals=B * L * L,            # exp
        bytes_accessed=3 * D * B * L * itemsize,
    )

    use_flash = (L % 128 == 0) and (
        L > 512 or _single_block_per_batch_bytes(L, itemsize) > budget)

    if use_flash:
        # Largest tile in {512, 256, 128} dividing L (per-step VMEM is tiny).
        tile = 128
        for t in (512, 256):
            if L % t == 0:
                tile = t
                break
        tq = tk = tile
        grid = (B, L // tq, L // tk)

        q_spec = pl.BlockSpec((1, D, tq), lambda b, qi, ki: (b, 0, qi))
        kv_spec = pl.BlockSpec((1, 2 * D, tk), lambda b, qi, ki: (b, 0, ki))
        out_spec = pl.BlockSpec((1, D, tq), lambda b, qi, ki: (b, 0, qi))

        return pl.pallas_call(
            _attn_flash_kernel,
            out_shape=jax.ShapeDtypeStruct((B, D, L), queries.dtype),
            grid_spec=pltpu.PrefetchScalarGridSpec(
                num_scalar_prefetch=0,
                grid=grid,
                in_specs=[q_spec, kv_spec],
                out_specs=out_spec,
                scratch_shapes=[
                    pltpu.VMEM((1, 1, tq), jnp.float32),   # running max
                    pltpu.VMEM((1, 1, tq), jnp.float32),   # running sum
                    pltpu.VMEM((1, D, tq), jnp.float32),   # f32 accumulator
                ]),
            compiler_params=pltpu.CompilerParams(
                dimension_semantics=("parallel", "parallel", "arbitrary"),
                vmem_limit_bytes=vmem_limit),
            cost_estimate=cost,
        )(queries, queries)

    # Small-L path: whole [L, L] softmax per batch block, single merged DMA.
    tb = _pick_batch_block(B, L, itemsize, budget)
    grid = (B // tb,)
    in_spec = pl.BlockSpec((tb, 2 * D, L), lambda b: (b, 0, 0))
    out_spec = pl.BlockSpec((tb, D, L), lambda b: (b, 0, 0))

    return pl.pallas_call(
        _attn_small_kernel,
        out_shape=jax.ShapeDtypeStruct((B, D, L), queries.dtype),
        grid_spec=pltpu.PrefetchScalarGridSpec(
            num_scalar_prefetch=0,
            grid=grid,
            in_specs=[in_spec],
            out_specs=out_spec),
        compiler_params=pltpu.CompilerParams(
            dimension_semantics=("parallel",),
            vmem_limit_bytes=vmem_limit),
        cost_estimate=cost,
    )(queries)


# --------------------------------------------------------------------------
# Pure-JAX reference (sanity check; identical semantics).
# --------------------------------------------------------------------------
def _reference(queries):
    x = jnp.transpose(queries, (0, 2, 1)).astype(jnp.float32)   # [B, L, 2D]
    q = x[:, :, :D] * SCALE
    k = x[:, :, :D]
    v = x[:, :, D:]
    logits = jnp.einsum("bld,bmd->blm", q, k)
    w = jax.nn.softmax(logits, axis=-1)
    out = jnp.einsum("blm,bmd->bld", w, v)
    return jnp.transpose(out, (0, 2, 1)).astype(queries.dtype)  # [B, D, L]


if __name__ == "__main__":
    key = jax.random.PRNGKey(0)
    k_small, k_big = jax.random.split(key)

    # Small-L path (whole-softmax kernel), module-consistent small shapes.
    B, L = 2, 8
    q_small = jax.random.normal(k_small, (B, 2 * D, L), dtype=jnp.float32)
    out = jax.block_until_ready(self_attention(q_small))
    assert out.shape == (B, D, L), out.shape
    assert jnp.allclose(out, _reference(q_small), atol=5e-3, rtol=5e-3), \
        "small-L path mismatch vs reference"

    # Flash (L-tiled, online-softmax) path.
    B2, L2 = 2, 640
    q_big = jax.random.normal(k_big, (B2, 2 * D, L2), dtype=jnp.float32)
    out2 = jax.block_until_ready(self_attention(q_big))
    assert out2.shape == (B2, D, L2), out2.shape
    assert jnp.allclose(out2, _reference(q_big), atol=5e-3, rtol=5e-3), \
        "flash path mismatch vs reference"

    print("KERNEL_OK")
</pallas_src>

<mosaic_0001>
module attributes {stable_mosaic.version = 11 : i64} {
  func.func @_attn_small_kernel(%arg0: i32, %arg1: memref<1x400x8xf32, #tpu.memory_space<vmem>>, %arg2: memref<1x200x8xf32, #tpu.memory_space<vmem>>) attributes {dimension_semantics = [#tpu.dimension_semantics<parallel>], iteration_bounds = array<i64: 2>, scalar_prefetch = 0 : i64, scratch_operands = 0 : i64, tpu.core_type = #tpu.core_type<tc>, window_params = [{transform_indices = @transform_0, window_bounds = array<i64: 1, 400, 8>}, {transform_indices = @transform_1, window_bounds = array<i64: 1, 200, 8>}]} {
    %c0 = arith.constant 0 : index
    %c0_0 = arith.constant 0 : index
    %c0_1 = arith.constant 0 : index
    %0 = vector.load %arg1[%c0, %c0_0, %c0_1] : memref<1x400x8xf32, #tpu.memory_space<vmem>>, vector<1x200x8xf32>
    %cst = arith.constant 0.265914798 : f32
    %1 = vector.broadcast %cst : f32 to vector<1x200x8xf32>
    %2 = arith.mulf %0, %1 : vector<1x200x8xf32>
    %c0_2 = arith.constant 0 : index
    %c200 = arith.constant 200 : index
    %c0_3 = arith.constant 0 : index
    %3 = vector.load %arg1[%c0_2, %c200, %c0_3] : memref<1x400x8xf32, #tpu.memory_space<vmem>>, vector<1x200x8xf32>
    "tpu.trace_start"() <{level = 10 : i32, message = "bdk,bdq->bkq"}> : () -> ()
    %cst_4 = arith.constant dense<0.000000e+00> : vector<1x8x8xf32>
    %4 = tpu.matmul %2, %2, %cst_4 {dimension_numbers = #tpu.dot_dimension_numbers<[1], [1], [2], [2], [0, 0, 0, 2, 1, 2], [0], [0]>} : vector<1x200x8xf32>, vector<1x200x8xf32>, vector<1x8x8xf32> -> vector<1x8x8xf32>
    "tpu.trace_stop"() : () -> ()
    %cst_5 = arith.constant dense<0xFF800000> : vector<1x8xf32>
    %5 = vector.multi_reduction <maximumf>, %4, %cst_5 [1] : vector<1x8x8xf32> to vector<1x8xf32>
    %6 = vector.shape_cast %5 : vector<1x8xf32> to vector<1x1x8xf32>
    %7 = vector.broadcast %6 : vector<1x1x8xf32> to vector<1x8x8xf32>
    %8 = arith.subf %4, %7 : vector<1x8x8xf32>
    %9 = math.exp %8 : vector<1x8x8xf32>
    %cst_6 = arith.constant dense<0.000000e+00> : vector<1x8xf32>
    %10 = vector.multi_reduction <add>, %9, %cst_6 [1] : vector<1x8x8xf32> to vector<1x8xf32>
    %11 = vector.shape_cast %10 : vector<1x8xf32> to vector<1x1x8xf32>
    %12 = tpu.reciprocal %11 {approx = true} : vector<1x1x8xf32> -> vector<1x1x8xf32>
    %13 = vector.broadcast %12 : vector<1x1x8xf32> to vector<1x8x8xf32>
    %14 = arith.mulf %9, %13 : vector<1x8x8xf32>
    "tpu.trace_start"() <{level = 10 : i32, message = "bdk,bkq->bdq"}> : () -> ()
    %cst_7 = arith.constant dense<0.000000e+00> : vector<1x200x8xf32>
    %15 = tpu.matmul %3, %14, %cst_7 {dimension_numbers = #tpu.dot_dimension_numbers<[2], [1], [1], [2], [0, 0, 0, 1, 1, 2], [0], [0]>} : vector<1x200x8xf32>, vector<1x8x8xf32>, vector<1x200x8xf32> -> vector<1x200x8xf32>
    "tpu.trace_stop"() : () -> ()
    %c0_8 = arith.constant 0 : index
    %c0_9 = arith.constant 0 : index
    %c0_10 = arith.constant 0 : index
    %16 = vector.load %arg2[%c0_8, %c0_9, %c0_10] : memref<1x200x8xf32, #tpu.memory_space<vmem>>, vector<1x200x8xf32>
    tpu.vector_store %arg2[%c0_8, %c0_9, %c0_10], %15 {strides = array<i32>} : memref<1x200x8xf32, #tpu.memory_space<vmem>>, vector<1x200x8xf32>,
    return
  }
  func.func @transform_0(%arg0: i32) -> (i32, i32, i32) {
    %c0_i32 = arith.constant 0 : i32
    %c0_i32_0 = arith.constant 0 : i32
    %c0_i32_1 = arith.constant 0 : i32
    return %arg0, %c0_i32, %c0_i32_0 : i32, i32, i32
  }
  func.func @transform_1(%arg0: i32) -> (i32, i32, i32) {
    %c0_i32 = arith.constant 0 : i32
    %c0_i32_0 = arith.constant 0 : i32
    %c0_i32_1 = arith.constant 0 : i32
    return %arg0, %c0_i32, %c0_i32_0 : i32, i32, i32
  }
}

</mosaic_0001>

<bundles_post_ra>
// kernel: tpu_custom_call.1
= control target key start
LH: loop header
LB: loop body
LE: loop exit
PB: predicated region body
PF: predicated region fallthrough
CT: control target
= control target key end

     0   :  { %s641_s6 = smov 0   ;;  %s829_s0 = inlined_call_operand.vmem [shape: f32[2,400,8], index: 0, kind: input, shape index: {}]   ;;  %s830_s1 = inlined_call_operand.vmem [shape: f32[2,200,8], index: 1, kind: output, shape index: {}]  }
   0x1 LB: > { %s567_s7 = sadd.s32 4294967295, %s629_s6   ;;  %p571_p0 = scmp.ge.s32.totalorder %s629_s6, 1  ;;  %s629_s6 = sphi %s641_s6, %s11_s6  }
   0x2   : > { %p87_p1 = scmp.lt.s32.totalorder %s629_s6, 3 }
   0x4   : > { %p88_p2 = pnand %p571_p0, %p87_p1 }
   0x5   : > { %p107_p3 = scmp.lt.s32.totalorder (!%p88_p2), %s567_s7, 1 }
   0x6   : > { %91 = sbr.rel (%p88_p2) target bundleno = 557 (0x22d), region = 24 }
   0xb   : > { %s832_s7 = smov (!%p107_p3, %s567_s7), 1  ;;  %vm256_vm0 = vcmask 588800   ;;  %vm300_vm1 = vcmask 64512  }
   0xc   : > { %s608_s8 = smul.u32 400, %s832_s7 }
   0xd   : > { %s609_s12 = smul.u32 200, %s832_s7 }
   0xe   : > { %s655_s11 = scalar_lea.vmem %s829_s0, %s608_s8 }
   0xf   : > { %v117_v0 = vld [vmem:[%s655_s11] sm:$0xff]  ;;  %v118_v4 = vld [vmem:[%s655_s11 + $0x8] sm:$0xff]  ;;  %v119_v8 = vld [vmem:[%s655_s11 + $0x10] sm:$0xff]  ;;  %s774_s15 = scalar_lea.vmem %s830_s1, %s609_s12 }
  0x10   : > { %v133_v1 = vld [vmem:[%s655_s11 + $0x80] sm:$0xff]  ;;  %v659_v2 = vmul.f32 0.2659148, %v117_v0  ;;  %v134_v5 = vld [vmem:[%s655_s11 + $0x88] sm:$0xff]  ;;  %v667_v6 = vmul.f32 0.2659148, %v118_v4 }
  0x11   : > { %v661_v3 = vmul.f32 0.2659148, %v133_v1  ;;  %v669_v7 = vmul.f32 0.2659148, %v134_v5  ;;  %v135_v9 = vld [vmem:[%s655_s11 + $0x90] sm:$0xff]  ;;  %v120_v12 = vld [vmem:[%s655_s11 + $0x18] sm:$0xff] }
  0x12   : > { %192 = vxpose.xlu0.b32.start [1/16] (narrow) %v659_v2, 8  ;;  %v675_v10 = vmul.f32 0.2659148, %v119_v8  ;;  %v677_v11 = vmul.f32 0.2659148, %v135_v9  ;;  %v136_v13 = vld [vmem:[%s655_s11 + $0x98] sm:$0xff] }
  0x13   : > { %224 = vxpose.xlu1.b32.start [1/9] (short) (narrow) %v661_v3, 8  ;;  %v683_v14 = vmul.f32 0.2659148, %v120_v12  ;;  %v685_v15 = vmul.f32 0.2659148, %v136_v13  ;;  %v121_v16 = vld [vmem:[%s655_s11 + $0x20] sm:$0xff] }
  0x14   : > { %v137_v17 = vld [vmem:[%s655_s11 + $0xa0] sm:$0xff]  ;;  %v146_v18 = vmul.f32 0.2659148, %v121_v16  ;;  %v122_v20 = vld [vmem:[%s655_s11 + $0x28] sm:$0xff]  ;;  %v123_v24 = vld [vmem:[%s655_s11 + $0x30] sm:$0xff] }
  0x15   : > { %v691_v19 = vmul.f32 0.2659148, %v137_v17  ;;  %v138_v21 = vld [vmem:[%s655_s11 + $0xa8] sm:$0xff]  ;;  %v147_v22 = vmul.f32 0.2659148, %v122_v20  ;;  %v139_v25 = vld [vmem:[%s655_s11 + $0xb0] sm:$0xff] }
  0x16   : > { %v163_v23 = vmul.f32 0.2659148, %v138_v21  ;;  %v148_v26 = vmul.f32 0.2659148, %v123_v24  ;;  %v164_v27 = vmul.f32 0.2659148, %v139_v25 }
  0x17   : > { %v124_v28 = vld [vmem:[%s655_s11 + $0x38] sm:$0xff]  ;;  %v125_v32 = vld [vmem:[%s655_s11 + $0x40] sm:$0xff]  ;;  %v126_v36 = vld [vmem:[%s655_s11 + $0x48] sm:$0xff] }
  0x18   : > { %v140_v29 = vld [vmem:[%s655_s11 + $0xb8] sm:$0xff]  ;;  %v149_v30 = vmul.f32 0.2659148, %v124_v28  ;;  %v141_v33 = vld [vmem:[%s655_s11 + $0xc0] sm:$0xff]  ;;  %v150_v34 = vmul.f32 0.2659148, %v125_v32 }
  0x19   : > { %v165_v31 = vmul.f32 0.2659148, %v140_v29  ;;  %v166_v35 = vmul.f32 0.2659148, %v141_v33  ;;  %v151_v37 = vmul.f32 0.2659148, %v126_v36 }
  0x1a   : > { %193 = vxpose.xlu0.b32.cont [2/16] (narrow) %v667_v6, 8  ;;  %v127_v38 = vld [vmem:[%s655_s11 + $0x50] sm:$0xff]  ;;  %v132_v41 = vld [vmem:[%s655_s11 + $0x78] sm:$0xff]  ;;  %v130_v44 = vld [vmem:[%s655_s11 + $0x68] sm:$0xff] }
  0x1b   : > { %225 = vxpose.xlu1.b32.cont [2/9] (short) (narrow) %v669_v7, 8  ;;  %v152_v39 = vmul.f32 0.2659148, %v127_v38  ;;  %v131_v40 = vld [vmem:[%s655_s11 + $0x70] sm:$0xff]  ;;  %v128_v42 = vld [vmem:[%s655_s11 + $0x58] sm:$0xff]  ;;  %v129_v47 = vld [vmem:[%s655_s11 + $0x60] sm:$0xff] }
  0x1c   : > { %v157_v43 = vmul.f32 0.2659148, %v132_v41  ;;  %v156_v45 = vmul.f32 0.2659148, %v131_v40  ;;  %v153_v46 = vmul.f32 0.2659148, %v128_v42 }
  0x1d   : > { %v155_v48 = vmul.f32 0.2659148, %v130_v44  ;;  %v154_v49 = vmul.f32 0.2659148, %v129_v47  ;;  %v168_v12 = vld [vmem:[%s655_s11 + $0xd0] sm:$0xff]  ;;  %v177_v13 = vld [vmem:[%s655_s11 + $0x118] sm:$0xff] }
  0x1e   : > { %260 = vmatpush.msra.mxu0 %v157_v43  ;;  %v178_v16 = vld [vmem:[%s655_s11 + $0x120] sm:$0xff]  ;;  %v187_v20 = vld [vmem:[%s655_s11 + $0x168] sm:$0xff]  ;;  %v188_v24 = vld [vmem:[%s655_s11 + $0x170] sm:$0xff] }
  0x1f   : > { %v186_v17 = vld [vmem:[%s655_s11 + $0x160] sm:$0xff]  ;;  %v171_v21 = vld [vmem:[%s655_s11 + $0xe8] sm:$0xff]  ;;  %v172_v25 = vld [vmem:[%s655_s11 + $0xf0] sm:$0xff] }
  0x20   : > { %261 = vmatpush.msra.mxu0 %v156_v45  ;;  %v173_v28 = vld [vmem:[%s655_s11 + $0xf8] sm:$0xff]  ;;  %v182_v29 = vld [vmem:[%s655_s11 + $0x140] sm:$0xff]  ;;  %v183_v32 = vld [vmem:[%s655_s11 + $0x148] sm:$0xff] }
  0x21   : > { %v191_v33 = vld [vmem:[%s655_s11 + $0x188] sm:$0xff] }
  0x22   : > { %194 = vxpose.xlu0.b32.cont [3/16] (narrow) %v675_v10, 8  ;;  %262 = vmatpush.msra.mxu0 %v155_v48 }
  0x23   : > { %226 = vxpose.xlu1.b32.cont [3/9] (short) (narrow) %v677_v11, 8 }
  0x24   : > { %263 = vmatpush.msra.mxu0 %v154_v49 }
  0x26   : > { %264 = vmatpush.msra.mxu0 %v153_v46 }
  0x28   : > { %265 = vmatpush.msra.mxu0 %v152_v39 }
  0x2a   : > { %195 = vxpose.xlu0.b32.cont [4/16] (narrow) %v683_v14, 8  ;;  %266 = vmatpush.msra.mxu0 %v151_v37 }
  0x2b   : > { %227 = vxpose.xlu1.b32.cont [4/9] (short) (narrow) %v685_v15, 8 }
  0x2c   : > { %267 = vmatpush.msra.mxu0 %v150_v34 }
  0x2e   : > { %268 = vmatpush.msra.mxu0 %v149_v30 }
  0x30   : > { %269 = vmatpush.msra.mxu0 %v148_v26 }
  0x32   : > { %196 = vxpose.xlu0.b32.cont [5/16] (narrow) %v146_v18, 8  ;;  %270 = vmatpush.msra.mxu0 %v147_v22 }
  0x33   : > { %228 = vxpose.xlu1.b32.cont [5/9] (short) (narrow) %v691_v19, 8 }
  0x34   : > { %271 = vmatpush.msra.mxu0 %v146_v18  ;;  %v170_v18 = vld [vmem:[%s655_s11 + $0xe0] sm:$0xff] }
  0x36   : > { %272 = vmatpush.msra.mxu0 %v683_v14  ;;  %v185_v14 = vld [vmem:[%s655_s11 + $0x158] sm:$0xff] }
  0x38   : > { %273 = vmatpush.msra.mxu0 %v675_v10  ;;  %v176_v10 = vld [vmem:[%s655_s11 + $0x110] sm:$0xff] }
  0x3a   : > { %197 = vxpose.xlu0.b32.cont [6/16] (narrow) %v147_v22, 8  ;;  %274 = vmatpush.msra.mxu0 %v667_v6  ;;  %v167_v22 = vld [vmem:[%s655_s11 + $0xc8] sm:$0xff] }
  0x3b   : > { %229 = vxpose.xlu1.b32.cont [6/9] (short) (narrow) %v163_v23, 8 }
  0x3c   : > { %275 = vmatpush.msra.mxu0 %v659_v2 }
  0x3e   : > { %287 = vmatpush.msrb.mxu0 %v166_v35 }
  0x40   : > { %288 = vmatpush.msrb.mxu0 %v165_v31 }
  0x42   : > { %198 = vxpose.xlu0.b32.cont [7/16] (narrow) %v148_v26, 8  ;;  %289 = vmatpush.msrb.mxu0 %v164_v27  ;;  %v181_v26 = vld [vmem:[%s655_s11 + $0x138] sm:$0xff] }
  0x43   : > { %230 = vxpose.xlu1.b32.cont [7/9] (short) (narrow) %v164_v27, 8  ;;  %v189_v27 = vld [vmem:[%s655_s11 + $0x178] sm:$0xff] }
  0x44   : > { %290 = vmatpush.msrb.mxu0 %v163_v23  ;;  %v180_v23 = vld [vmem:[%s655_s11 + $0x130] sm:$0xff] }
  0x46   : > { %291 = vmatpush.msrb.mxu0 %v691_v19  ;;  %v179_v19 = vld [vmem:[%s655_s11 + $0x128] sm:$0xff] }
  0x48   : > { %292 = vmatpush.msrb.mxu0 %v685_v15  ;;  %v169_v15 = vld [vmem:[%s655_s11 + $0xd8] sm:$0xff] }
  0x4a   : > { %199 = vxpose.xlu0.b32.cont [8/16] (narrow) %v149_v30, 8  ;;  %293 = vmatpush.msrb.mxu0 %v677_v11  ;;  %v184_v11 = vld [vmem:[%s655_s11 + $0x150] sm:$0xff]  ;;  %v190_v30 = vld [vmem:[%s655_s11 + $0x180] sm:$0xff] }
  0x4b   : > { %231 = vxpose.xlu1.b32.cont [8/9] (short) (narrow) %v165_v31, 8  ;;  %v174_v31 = vld [vmem:[%s655_s11 + $0x100] sm:$0xff] }
  0x4c   : > { %294 = vmatpush.msrb.mxu0 %v669_v7 }
  0x4e   : > { %295 = vmatpush.msrb.mxu0 %v661_v3 }
  0x52   : > { %200 = vxpose.xlu0.b32.cont [9/16] (narrow) %v150_v34, 8  ;;  %v175_v34 = vld [vmem:[%s655_s11 + $0x108] sm:$0xff] }
  0x53   : > { %232 = vxpose.xlu1.b32.end [9/9] (short) (narrow) %v166_v35, 8 }
  0x5a   : > { %201 = vxpose.xlu0.b32.cont [10/16] (narrow) %v151_v37, 8 }
  0x62   : > { %202 = vxpose.xlu0.b32.cont [11/16] (narrow) %v152_v39, 8 }
  0x6a   : > { %203 = vxpose.xlu0.b32.cont [12/16] (narrow) %v153_v46, 8 }
  0x72   : > { %204 = vxpose.xlu0.b32.cont [13/16] (narrow) %v154_v49, 8 }
  0x7a   : > { %205 = vxpose.xlu0.b32.cont [14/16] (narrow) %v155_v48, 8 }
  0x82   : > { %206 = vxpose.xlu0.b32.cont [15/16] (narrow) %v156_v45, 8 }
  0x8a   : > { %207 = vxpose.xlu0.b32.end [16/16] (narrow) %v157_v43, 8 }
  0xb6   : > { %v208_v50 = vpop.trf.xlu0 }
  0xb7   : > { %276 = vmatmul.f32.vlgmr.msra.gmra.mxu0 %v208_v50  ;;  %v240_v51 = vpop.trf.xlu1 }
  0xbf   : > { %574 = vmatmul.msk.f32.vlgmr.msrb.gmra.mxu0 %vm256_vm0, %v240_v51 }
 0x134   : > { %v277_v52 = vpop.f32.mrf.mxu0 }
 0x13c   : > { %v297_v53 = vpop.f32.mrf.mxu0 }
 0x13d   : > { %v298_v54 = vadd.f32 %v297_v53, %v277_v52 }
 0x13f   : > { %v301_v55 = vsel %vm300_vm1, %v298_v54, -inf }
 0x140   : > { %v302_v56 = vrot.slane %v301_v55, 4 }
 0x142   : > { %v303_v57 = vmax.f32 %v301_v55, %v302_v56 }
 0x144   : > { %v304_v58 = vrot.slane %v303_v57, 2 }
 0x146   : > { %v305_v59 = vmax.f32 %v303_v57, %v304_v58 }
 0x148   : > { %v306_v60 = vrot.slane %v305_v59, 1 }
 0x14a   : > { %v307_v61 = vmax.f32 %v305_v59, %v306_v60 }
 0x14c   : > { %v308_v62 = vsub.f32 %v298_v54, %v307_v61 }
 0x14e   : > { %v309_v63 = vmul.f32 1.442695, %v308_v62 }
 0x150   : > { %619 = vpow2.f32 %v309_v63 }
 0x156   : > { %v620_v0 = vpop.eup %619 }
 0x157   : > { %v311_v1 = vsel %vm300_vm1, %v620_v0, 0.0 }
 0x158   : > { %v312_v2 = vrot.slane %v311_v1, 4 }
 0x15a   : > { %v313_v3 = vadd.f32 %v312_v2, %v311_v1 }
 0x15c   : > { %v314_v4 = vrot.slane %v313_v3, 2 }
 0x15e   : > { %v315_v5 = vadd.f32 %v314_v4, %v313_v3 }
 0x160   : > { %v316_v6 = vrot.slane %v315_v5, 1 }
 0x162   : > { %v317_v7 = vadd.f32 %v316_v6, %v315_v5 }
 0x164   : > { %621 = vrcp.f32 %v317_v7 }
 0x16a   : > { %v622_v8 = vpop.eup %621 }
 0x16b   : > { %v319_v9 = vmul.f32 %v622_v8, %v620_v0 }
 0x16d   : > { %410 = vmatpush.msra.mxu0 %v319_v9  ;;  %602 = vmatpush.msra.mxu1 %v319_v9 }
 0x16e   : > { %603 = vmatpush.msra.mxu2 %v319_v9  ;;  %604 = vmatpush.msra.mxu3 %v319_v9 }
 0x16f   : > { %584 = vmatmul.msk.f32.vlgmr.msra.gmra.mxu2 %vm300_vm1, %v176_v10  ;;  %592 = vmatmul.msk.f32.vlgmr.msra.gmra.mxu3 %vm300_vm1, %v184_v11 }
 0x170   : > { %576 = vmatmul.msk.f32.vlgmr.msra.gmra.mxu1 %vm300_vm1, %v168_v12  ;;  %575 = vmatmul.msk.f32.vlgmr.msra.gmra.mxu0 %vm300_vm1, %v167_v22 }
 0x177   : > { %585 = vmatmul.msk.f32.gmra.mxu2 %vm300_vm1, %v177_v13  ;;  %593 = vmatmul.msk.f32.gmra.mxu3 %vm300_vm1, %v185_v14 }
 0x178   : > { %577 = vmatmul.msk.f32.gmra.mxu1 %vm300_vm1, %v169_v15 }
 0x17f   : > { %586 = vmatmul.msk.f32.gmra.mxu2 %vm300_vm1, %v178_v16  ;;  %594 = vmatmul.msk.f32.gmra.mxu3 %vm300_vm1, %v186_v17 }
 0x180   : > { %578 = vmatmul.msk.f32.gmra.mxu1 %vm300_vm1, %v170_v18 }
 0x187   : > { %587 = vmatmul.msk.f32.gmra.mxu2 %vm300_vm1, %v179_v19  ;;  %595 = vmatmul.msk.f32.gmra.mxu3 %vm300_vm1, %v187_v20 }
 0x188   : > { %579 = vmatmul.msk.f32.gmra.mxu1 %vm300_vm1, %v171_v21 }
 0x18f   : > { %588 = vmatmul.msk.f32.gmra.mxu2 %vm300_vm1, %v180_v23  ;;  %596 = vmatmul.msk.f32.gmra.mxu3 %vm300_vm1, %v188_v24 }
 0x190   : > { %580 = vmatmul.msk.f32.gmra.mxu1 %vm300_vm1, %v172_v25 }
 0x197   : > { %589 = vmatmul.msk.f32.gmra.mxu2 %vm300_vm1, %v181_v26  ;;  %597 = vmatmul.msk.f32.gmra.mxu3 %vm300_vm1, %v189_v27 }
 0x198   : > { %581 = vmatmul.msk.f32.gmra.mxu1 %vm300_vm1, %v173_v28 }
 0x19f   : > { %590 = vmatmul.msk.f32.gmra.mxu2 %vm300_vm1, %v182_v29  ;;  %598 = vmatmul.msk.f32.gmra.mxu3 %vm300_vm1, %v190_v30 }
 0x1a0   : > { %582 = vmatmul.msk.f32.gmra.mxu1 %vm300_vm1, %v174_v31 }
 0x1a7   : > { %591 = vmatmul.msk.f32.gmra.mxu2 %vm300_vm1, %v183_v32  ;;  %599 = vmatmul.msk.f32.gmra.mxu3 %vm300_vm1, %v191_v33 }
 0x1a8   : > { %583 = vmatmul.msk.f32.gmra.mxu1 %vm300_vm1, %v175_v34 }
 0x1ed   : > { %v415_v35 = vpop.f32.mrf.mxu1  ;;  %v412_v45 = vpop.f32.mrf.mxu0 }
 0x1ee   : > { %488 = vst.msk [vmem:[%s774_s15 + $0x8] sm:$0xff] %vm300_vm1, %v415_v35 }
 0x1ef   : > { %487 = vst.msk [vmem:[%s774_s15] sm:$0xff] %vm300_vm1, %v412_v45 }
 0x1f2   : > { %v439_v36 = vpop.f32.mrf.mxu2  ;;  %v463_v37 = vpop.f32.mrf.mxu3 }
 0x1f3   : > { %496 = vst.msk [vmem:[%s774_s15 + $0x48] sm:$0xff] %vm300_vm1, %v439_v36 }
 0x1f4   : > { %504 = vst.msk [vmem:[%s774_s15 + $0x88] sm:$0xff] %vm300_vm1, %v463_v37 }
 0x1f5   : > { %v418_v38 = vpop.f32.mrf.mxu1 }
 0x1f6   : > { %489 = vst.msk [vmem:[%s774_s15 + $0x10] sm:$0xff] %vm300_vm1, %v418_v38 }
 0x1fa   : > { %v442_v39 = vpop.f32.mrf.mxu2  ;;  %v466_v40 = vpop.f32.mrf.mxu3 }
 0x1fb   : > { %497 = vst.msk [vmem:[%s774_s15 + $0x50] sm:$0xff] %vm300_vm1, %v442_v39 }
 0x1fc   : > { %505 = vst.msk [vmem:[%s774_s15 + $0x90] sm:$0xff] %vm300_vm1, %v466_v40 }
 0x1fd   : > { %v421_v41 = vpop.f32.mrf.mxu1 }
 0x1fe   : > { %490 = vst.msk [vmem:[%s774_s15 + $0x18] sm:$0xff] %vm300_vm1, %v421_v41 }
 0x202   : > { %v445_v42 = vpop.f32.mrf.mxu2  ;;  %v469_v43 = vpop.f32.mrf.mxu3 }
 0x203   : > { %498 = vst.msk [vmem:[%s774_s15 + $0x58] sm:$0xff] %vm300_vm1, %v445_v42 }
 0x204   : > { %506 = vst.msk [vmem:[%s774_s15 + $0x98] sm:$0xff] %vm300_vm1, %v469_v43 }
 0x205   : > { %v424_v44 = vpop.f32.mrf.mxu1 }
 0x206   : > { %491 = vst.msk [vmem:[%s774_s15 + $0x20] sm:$0xff] %vm300_vm1, %v424_v44 }
 0x20a   : > { %v448_v46 = vpop.f32.mrf.mxu2  ;;  %v472_v47 = vpop.f32.mrf.mxu3 }
 0x20b   : > { %499 = vst.msk [vmem:[%s774_s15 + $0x60] sm:$0xff] %vm300_vm1, %v448_v46 }
 0x20c   : > { %507 = vst.msk [vmem:[%s774_s15 + $0xa0] sm:$0xff] %vm300_vm1, %v472_v47 }
 0x20d   : > { %v427_v48 = vpop.f32.mrf.mxu1 }
 0x20e   : > { %492 = vst.msk [vmem:[%s774_s15 + $0x28] sm:$0xff] %vm300_vm1, %v427_v48 }
 0x212   : > { %v451_v49 = vpop.f32.mrf.mxu2  ;;  %v475_v50 = vpop.f32.mrf.mxu3 }
 0x213   : > { %500 = vst.msk [vmem:[%s774_s15 + $0x68] sm:$0xff] %vm300_vm1, %v451_v49 }
 0x214   : > { %508 = vst.msk [vmem:[%s774_s15 + $0xa8] sm:$0xff] %vm300_vm1, %v475_v50 }
 0x215   : > { %v430_v51 = vpop.f32.mrf.mxu1 }
 0x216   : > { %493 = vst.msk [vmem:[%s774_s15 + $0x30] sm:$0xff] %vm300_vm1, %v430_v51 }
 0x21a   : > { %v454_v52 = vpop.f32.mrf.mxu2  ;;  %v478_v53 = vpop.f32.mrf.mxu3 }
 0x21b   : > { %501 = vst.msk [vmem:[%s774_s15 + $0x70] sm:$0xff] %vm300_vm1, %v454_v52 }
 0x21c   : > { %509 = vst.msk [vmem:[%s774_s15 + $0xb0] sm:$0xff] %vm300_vm1, %v478_v53 }
 0x21d   : > { %v433_v54 = vpop.f32.mrf.mxu1 }
 0x21e   : > { %494 = vst.msk [vmem:[%s774_s15 + $0x38] sm:$0xff] %vm300_vm1, %v433_v54 }
 0x222   : > { %v457_v55 = vpop.f32.mrf.mxu2  ;;  %v481_v56 = vpop.f32.mrf.mxu3 }
 0x223   : > { %502 = vst.msk [vmem:[%s774_s15 + $0x78] sm:$0xff] %vm300_vm1, %v457_v55 }
 0x224   : > { %510 = vst.msk [vmem:[%s774_s15 + $0xb8] sm:$0xff] %vm300_vm1, %v481_v56 }
 0x225   : > { %v436_v57 = vpop.f32.mrf.mxu1 }
 0x226   : > { %495 = vst.msk [vmem:[%s774_s15 + $0x40] sm:$0xff] %vm300_vm1, %v436_v57 }
 0x22a   : > { %v460_v58 = vpop.f32.mrf.mxu2  ;;  %v484_v59 = vpop.f32.mrf.mxu3 }
 0x22b   : > { %503 = vst.msk [vmem:[%s774_s15 + $0x80] sm:$0xff] %vm300_vm1, %v460_v58 }
 0x22c   : > { %511 = vst.msk [vmem:[%s774_s15 + $0xc0] sm:$0xff] %vm300_vm1, %v484_v59 }
 0x22d PF: > { %s11_s6 = sadd.s32 1, %s629_s6  }
 0x22e   : > { %p8_p4 = scmp.ge.s32.totalorder %s11_s6, 4  }
 0x230   :  { %10 = sbr.rel (!%p8_p4) target bundleno = 1 (0x1), region = 54 }

</bundles_post_ra>
